<compile_context>
chip_gen: v6e
topology: v6e:2x2x1
jax: 0.10.0
libtpu: 0.0.40
codegen_flags: <defaults>
</compile_context>

<pallas_src>
import functools

import jax
import jax.numpy as jnp
from jax import lax
from jax.experimental import pallas as pl
from jax.experimental.pallas import tpu as pltpu


def _gram_loss_kernel(x_ref, y_ref, o_ref, *, inv_hw, hw, tk, ragged):
    # x_ref, y_ref: (C, TK) VMEM tiles (batch dim squeezed), native dtype.
    # o_ref:        (C, C) f32 per-batch accumulator, resident across the k
    #               axis; holds (X + Y)(X - Y)^T / HW once the batch is done.
    k = pl.program_id(1)
    nk = pl.num_programs(1)

    @pl.when(k == 0)
    def _init():
        o_ref[...] = jnp.zeros_like(o_ref)

    # Sum/diff in f32 on the VPU (avoids low-precision cancellation when
    # x ~= y), then cast back to the native dtype so the MXU runs at native
    # speed for bf16 inputs (no-op for f32 inputs).
    x = x_ref[...].astype(jnp.float32)
    y = y_ref[...].astype(jnp.float32)
    s = x + y
    d = x - y

    if ragged:
        # Last k tile overhangs HW.  The overhang reads unspecified VMEM
        # (could even be NaN/Inf), so zero BOTH operands on invalid lanes.
        valid = hw - k * tk
        col = lax.broadcasted_iota(jnp.int32, s.shape, 1)
        keep = col < valid
        s = jnp.where(keep, s, 0.0)
        d = jnp.where(keep, d, 0.0)

    s = s.astype(x_ref.dtype)
    d = d.astype(x_ref.dtype)

    # Contract the HW axis of both operands directly: no in-kernel transpose.
    dn = (((1,), (1,)), ((), ()))
    o_ref[...] += lax.dot_general(s, d, dimension_numbers=dn,
                                  preferred_element_type=jnp.float32)

    @pl.when(k == nk - 1)
    def _finalize():
        # Fold the 1/HW gram scaling in exactly once.
        o_ref[...] = o_ref[...] * jnp.float32(inv_hw)


def _choose_tk(c, hw, itemsize, total_vmem_budget_bytes=24 << 20):
    """Largest HW tile (multiple of 128) such that the pipelined buffers fit:
    2 inputs x 2 pipeline buffers x (c * tk * itemsize)  +  2 x (c, c) f32
    output buffers, with headroom under the 32 MiB scoped-VMEM limit we
    request (conservative for v5e/v6e/v7x alike)."""
    out_bytes = 2 * c * c * 4                       # double-buffered output
    input_budget = max(total_vmem_budget_bytes - out_bytes - (1 << 20), 1 << 20)
    tk = input_budget // (4 * c * itemsize)
    tk = max(128, (tk // 128) * 128)
    hw_ceil128 = ((hw + 127) // 128) * 128
    return min(tk, hw_ceil128)


def gram_loss(x, y):
    """x, y: (B, C, H, W) arrays (NCHW).  Returns the scalar MSE between gram
    matrices: mean((x @ x^T / HW - y @ y^T / HW)^2), matching GramLoss."""
    assert x.shape == y.shape and x.dtype == y.dtype
    b, c, h, w = x.shape
    hw = h * w
    xf = x.reshape(b, c, hw)
    yf = y.reshape(b, c, hw)

    itemsize = jnp.dtype(x.dtype).itemsize
    tk = _choose_tk(c, hw, itemsize)
    nk = -(-hw // tk)                 # ceil-div; NO padding copy of x / y
    ragged = (hw % tk) != 0

    cost = pl.CostEstimate(
        flops=2 * b * c * c * hw,     # single symmetrized matmul per tile
        bytes_accessed=2 * b * c * hw * itemsize + b * c * c * 4,
        transcendentals=0,
    )

    kernel = functools.partial(_gram_loss_kernel, inv_hw=1.0 / hw,
                               hw=hw, tk=tk, ragged=ragged)

    # TODO(synk): for B == 1 on v7x, split the reduction across the two
    # TensorCores (CORE_PARALLEL leading axis + partial-gram combine).
    # TODO(synk): for very large C (>~2048 f32), tile the gram rows over an
    # extra grid axis instead of letting _choose_tk shrink TK toward 128.
    g = pl.pallas_call(
        kernel,
        out_shape=jax.ShapeDtypeStruct((b, c, c), jnp.float32),
        grid_spec=pltpu.PrefetchScalarGridSpec(
            num_scalar_prefetch=0,
            grid=(b, nk),
            in_specs=[
                pl.BlockSpec((pl.Squeezed(), c, tk), lambda i, k: (i, 0, k)),
                pl.BlockSpec((pl.Squeezed(), c, tk), lambda i, k: (i, 0, k)),
            ],
            out_specs=pl.BlockSpec((pl.Squeezed(), c, c),
                                   lambda i, k: (i, 0, 0)),
        ),
        compiler_params=pltpu.CompilerParams(
            dimension_semantics=("parallel", "arbitrary"),
            vmem_limit_bytes=32 << 20,
        ),
        cost_estimate=cost,
    )(xf, yf)

    # g[b] = (X+Y)(X-Y)^T / HW; the gram difference is its symmetric part.
    delta = 0.5 * (g + jnp.swapaxes(g, 1, 2))
    return jnp.mean(delta * delta)


def _gram_loss_ref(x, y):
    b, c, h, w = x.shape
    hw = h * w
    xf = x.reshape(b, c, hw).astype(jnp.float32)
    yf = y.reshape(b, c, hw).astype(jnp.float32)
    gx = jnp.einsum("bik,bjk->bij", xf, xf) / hw
    gy = jnp.einsum("bik,bjk->bij", yf, yf) / hw
    return jnp.mean((gx - gy) ** 2)


if __name__ == "__main__":
    key = jax.random.PRNGKey(0)
    kx, ky = jax.random.split(key)
    B, C, H, W = 2, 4, 16, 16
    x = jax.random.normal(kx, (B, C, H, W), dtype=jnp.float32)
    y = jax.random.normal(ky, (B, C, H, W), dtype=jnp.float32)

    out = jax.block_until_ready(gram_loss(x, y))
    ref = jax.block_until_ready(_gram_loss_ref(x, y))

    assert jnp.allclose(out, ref, rtol=1e-5, atol=1e-5), (out, ref)
    print("KERNEL_OK")
</pallas_src>

<mosaic_0001>
module attributes {stable_mosaic.version = 11 : i64} {
  func.func @_gram_loss_kernel(%arg0: i32, %arg1: i32, %arg2: memref<1x4x256xf32, #tpu.memory_space<vmem>>, %arg3: memref<1x4x256xf32, #tpu.memory_space<vmem>>, %arg4: memref<1x4x4xf32, #tpu.memory_space<vmem>>) attributes {dimension_semantics = [#tpu.dimension_semantics<parallel>, #tpu.dimension_semantics<arbitrary>], iteration_bounds = array<i64: 2, 1>, scalar_prefetch = 0 : i64, scratch_operands = 0 : i64, tpu.core_type = #tpu.core_type<tc>, window_params = [{transform_indices = @transform_0, window_bounds = array<i64: 1, 4, 256>}, {transform_indices = @transform_1, window_bounds = array<i64: 1, 4, 256>}, {transform_indices = @transform_2, window_bounds = array<i64: 1, 4, 4>}]} {
    %c0_i32 = arith.constant 0 : i32
    %0 = arith.cmpi eq, %arg1, %c0_i32 : i32
    %1 = arith.extui %0 : i1 to i32
    %c0_i32_0 = arith.constant 0 : i32
    %2 = arith.cmpi ne, %1, %c0_i32_0 : i32
    scf.if %2 {
      %cst_14 = arith.constant 0.000000e+00 : f32
      %19 = vector.broadcast %cst_14 : f32 to vector<4x4xf32>
      %c0_15 = arith.constant 0 : index
      %c0_16 = arith.constant 0 : index
      %c0_17 = arith.constant 0 : index
      %20 = vector.load %arg4[%c0_15, %c0_16, %c0_17] : memref<1x4x4xf32, #tpu.memory_space<vmem>>, vector<1x4x4xf32>
      %21 = vector.shape_cast %20 : vector<1x4x4xf32> to vector<4x4xf32>
      %22 = vector.shape_cast %19 : vector<4x4xf32> to vector<1x4x4xf32>
      tpu.vector_store %arg4[%c0_15, %c0_16, %c0_17], %22 {strides = array<i32>} : memref<1x4x4xf32, #tpu.memory_space<vmem>>, vector<1x4x4xf32>,
    } else {
    }
    %c0 = arith.constant 0 : index
    %c0_1 = arith.constant 0 : index
    %c0_2 = arith.constant 0 : index
    %3 = vector.load %arg2[%c0, %c0_1, %c0_2] : memref<1x4x256xf32, #tpu.memory_space<vmem>>, vector<1x4x256xf32>
    %4 = vector.shape_cast %3 : vector<1x4x256xf32> to vector<4x256xf32>
    %c0_3 = arith.constant 0 : index
    %c0_4 = arith.constant 0 : index
    %c0_5 = arith.constant 0 : index
    %5 = vector.load %arg3[%c0_3, %c0_4, %c0_5] : memref<1x4x256xf32, #tpu.memory_space<vmem>>, vector<1x4x256xf32>
    %6 = vector.shape_cast %5 : vector<1x4x256xf32> to vector<4x256xf32>
    %7 = arith.addf %4, %6 : vector<4x256xf32>
    %8 = arith.subf %4, %6 : vector<4x256xf32>
    %c0_6 = arith.constant 0 : index
    %c0_7 = arith.constant 0 : index
    %c0_8 = arith.constant 0 : index
    %9 = vector.load %arg4[%c0_6, %c0_7, %c0_8] : memref<1x4x4xf32, #tpu.memory_space<vmem>>, vector<1x4x4xf32>
    %10 = vector.shape_cast %9 : vector<1x4x4xf32> to vector<4x4xf32>
    %cst = arith.constant dense<0.000000e+00> : vector<4x4xf32>
    %11 = tpu.matmul %7, %8, %cst {dimension_numbers = #tpu.dot_dimension_numbers<[1], [1], [0], [0], [0, 0, 1, 0], [], []>} : vector<4x256xf32>, vector<4x256xf32>, vector<4x4xf32> -> vector<4x4xf32>
    %12 = arith.addf %10, %11 : vector<4x4xf32>
    %c0_9 = arith.constant 0 : index
    %c0_10 = arith.constant 0 : index
    %c0_11 = arith.constant 0 : index
    %13 = vector.load %arg4[%c0_9, %c0_10, %c0_11] : memref<1x4x4xf32, #tpu.memory_space<vmem>>, vector<1x4x4xf32>
    %14 = vector.shape_cast %13 : vector<1x4x4xf32> to vector<4x4xf32>
    %15 = vector.shape_cast %12 : vector<4x4xf32> to vector<1x4x4xf32>
    tpu.vector_store %arg4[%c0_9, %c0_10, %c0_11], %15 {strides = array<i32>} : memref<1x4x4xf32, #tpu.memory_space<vmem>>, vector<1x4x4xf32>,
    %c0_i32_12 = arith.constant 0 : i32
    %16 = arith.cmpi eq, %arg1, %c0_i32_12 : i32
    %17 = arith.extui %16 : i1 to i32
    %c0_i32_13 = arith.constant 0 : i32
    %18 = arith.cmpi ne, %17, %c0_i32_13 : i32
    scf.if %18 {
      %c0_14 = arith.constant 0 : index
      %c0_15 = arith.constant 0 : index
      %c0_16 = arith.constant 0 : index
      %19 = vector.load %arg4[%c0_14, %c0_15, %c0_16] : memref<1x4x4xf32, #tpu.memory_space<vmem>>, vector<1x4x4xf32>
      %20 = vector.shape_cast %19 : vector<1x4x4xf32> to vector<4x4xf32>
      %cst_17 = arith.constant 3.906250e-03 : f32
      %21 = vector.broadcast %cst_17 : f32 to vector<4x4xf32>
      %22 = arith.mulf %20, %21 : vector<4x4xf32>
      %c0_18 = arith.constant 0 : index
      %c0_19 = arith.constant 0 : index
      %c0_20 = arith.constant 0 : index
      %23 = vector.load %arg4[%c0_18, %c0_19, %c0_20] : memref<1x4x4xf32, #tpu.memory_space<vmem>>, vector<1x4x4xf32>
      %24 = vector.shape_cast %23 : vector<1x4x4xf32> to vector<4x4xf32>
      %25 = vector.shape_cast %22 : vector<4x4xf32> to vector<1x4x4xf32>
      tpu.vector_store %arg4[%c0_18, %c0_19, %c0_20], %25 {strides = array<i32>} : memref<1x4x4xf32, #tpu.memory_space<vmem>>, vector<1x4x4xf32>,
    } else {
    }
    return
  }
  func.func @transform_0(%arg0: i32, %arg1: i32) -> (i32, i32, i32) {
    %c0_i32 = arith.constant 0 : i32
    %c0_i32_0 = arith.constant 0 : i32
    return %arg0, %c0_i32, %arg1 : i32, i32, i32
  }
  func.func @transform_1(%arg0: i32, %arg1: i32) -> (i32, i32, i32) {
    %c0_i32 = arith.constant 0 : i32
    %c0_i32_0 = arith.constant 0 : i32
    return %arg0, %c0_i32, %arg1 : i32, i32, i32
  }
  func.func @transform_2(%arg0: i32, %arg1: i32) -> (i32, i32, i32) {
    %c0_i32 = arith.constant 0 : i32
    %c0_i32_0 = arith.constant 0 : i32
    %c0_i32_1 = arith.constant 0 : i32
    return %arg0, %c0_i32, %c0_i32_0 : i32, i32, i32
  }
}

</mosaic_0001>

<bundles_post_ra>
// kernel: tpu_custom_call.1
= control target key start
LH: loop header
LB: loop body
LE: loop exit
PB: predicated region body
PF: predicated region fallthrough
CT: control target
= control target key end

     0   :  { %7 = vsyncpa [#allocation3], 0  ;;  %s851_s0 = inlined_call_operand.hbm [shape: f32[2,4,256], index: 0, kind: input, shape index: {}]   ;;  %s852_s1 = inlined_call_operand.hbm [shape: f32[2,4,256], index: 1, kind: input, shape index: {}]   ;;  %s853_s2 = inlined_call_operand.hbm [shape: f32[2,4,4], index: 2, kind: output, shape index: {}]  }
   0x1   :  { %9 = vsyncpa [#allocation3 + $0x1], 0 }
   0x2   :  { %10 = vsyncpa [#allocation6], 0 }
   0x3   :  { %12 = vsyncpa [#allocation6 + $0x1], 0 }
   0x4   :  { %13 = vsyncpa [#allocation4], 0 }
   0x5   :  { %15 = vsyncpa [#allocation4 + $0x1], 0  ;;  %s686_s9 = smov 0   ;;  %s688_s10 = smov 0  }
   0x6   :  { %s690_s11 = smov 0   ;;  %s692_s12 = smov 0  }
   0x7   :  { %s694_s13 = smov 0   ;;  %s696_s14 = smov 0  }
   0x8 LB: > { %s437_s15 = sadd.s32 4294967295, %s665_s14   ;;  %s438_s16 = sadd.s32 4294967294, %s665_s14   ;;  %s665_s14 = sphi %s696_s14, %s21_s14   ;;  %s661_s13 = sphi %s694_s13, %s865_s13   ;;  %s657_s12 = sphi %s692_s12, %s864_s12   ;;  %s653_s11 = sphi %s690_s11, %s863_s11   ;;  %s649_s10 = sphi %s688_s10, %s862_s10   ;;  %s645_s9 = sphi %s686_s9, %s861_s9  }
   0x9   : > { %s33_s17 = sadd.s32 1, %s661_s13  ;;  %s42_s18 = sadd.s32 1, %s653_s11 }
   0xa   : > { %p35_p0 = scmp.ge.s32.totalorder %s33_s17, 2  ;;  %p49_p1 = scmp.ne.s32.totalorder %s653_s11, %s649_s10 }
   0xb   : > { %p50_p2 = scmp.eq.s32.totalorder %s665_s14, 0  ;;  %p55_p3 = scmp.ne.s32.totalorder %s649_s10, %s645_s9 }
   0xc   : > { %s867_s17 = smov (%p35_p0, %s33_s17), 0  ;;  %p56_p5 = scmp.eq.s32.totalorder %s437_s15, 0 }
   0xd   : > { %p727_p4 = por %p50_p2, %p49_p1  ;;  %s37_s20 = ssub.s32 %s661_s13, %s867_s17 }
   0xe   : > { %p107_p6 = scmp.eq.s32.totalorder %s437_s15, 1  ;;  %p40_p7 = scmp.eq.s32.totalorder %s37_s20, 0 }
   0xf   : > { %p733_p8 = por %p56_p5, %p55_p3  ;;  %p113_p10 = scmp.eq.s32.totalorder %s438_s16, 1 }
  0x10   : > { %p737_p9 = por %p107_p6, %p49_p1  ;;  %p474_p13 = scmp.lt.s32.totalorder %s665_s14, 2 }
  0x11   : > { %s742_s23 = scalar_select %p40_p7, %s653_s11, %s42_s18  }
  0x12   : > { %p744_p11 = por %p113_p10, %p55_p3  ;;  %s751_s25 = sand.u32 1, %s653_s11  }
  0x13   : > { %s441_s26 = sshll.u32 %s751_s25, 3  ;;  %s455_s27 = sshll.u32 %s661_s13, 7 }
  0x14   : > { %s145_s30 = scalar_lea.hbm %s851_s0, %s455_s27  ;;  %s137_s3 = scalar_lea.vmem [#allocation2], %s441_s26 }
  0x15   : > { %s147_s4 = sshll.u32 %s137_s3, 4  ;;  %p760_p0 = pnand %p474_p13, %p727_p4  ;;  %s148_s4 = int_to_ptr.vmem [resolvable:$true] %s147_s4 }
  0x16   : > { %p447_p1 = scmp.ge.s32.totalorder %s665_s14, 1  ;;  %p173_p2 = scmp.lt.s32.totalorder %s665_s14, 3 }
  0x17   : > { %s134_s6 = scalar_lea.sflag [#allocation3], %s751_s25  ;;  %p527_p3 = pneg %p760_p0 }
  0x18   : > { %s538_s7 = scalar_lea.vmem %s148_s4, 128  ;;  %s667_s8 = smov [#allocation2]  }
  0x19   : > { %p539_p5 = scmp.ne.s32.totalorder %s148_s4, %s538_s7  ;;  %s543_s15 = sshll.u32 %s667_s8, 4  ;;  %s544_s15 = int_to_ptr.vmem [resolvable:$false] %s543_s15 }
  0x1a   : > { %s545_s16 = scalar_lea.vmem %s544_s15, 256  ;;  %p546_p4 = scmp.lt.s32.totalorder %s148_s4, %s544_s15 }
  0x1b   : > { %p541_p6 = pnand %p539_p5, %p527_p3  ;;  %p547_p10 = scmp.lt.s32.totalorder %s545_s16, %s538_s7 }
  0x1d   : > { %p542_p7 = pneg %p541_p6  ;;  %p548_p13 = por %p547_p10, %p546_p4 }
  0x1f   : > { %p549_p12 = pnand %p548_p13, %p542_p7 }
  0x21   : > { %552 = shalt.err (!%p549_p12)
}
  0x22   : > { %466 = dma.hbm_to_vmem [thread:$0]  (!%p760_p0), %s145_s30, 128, %s148_s4, %s134_s6  }
  0x23   : > { %p778_p5 = pnand %p447_p1, %p173_p2  ;;  %s166_s28 = scalar_lea.hbm %s852_s1, %s455_s27 }
  0x24   : > { %s158_s29 = scalar_lea.vmem [#allocation5], %s441_s26  ;;  %s155_s7 = scalar_lea.sflag [#allocation6], %s751_s25 }
  0x25   : > { %s168_s3 = sshll.u32 %s158_s29, 4  ;;  %s668_s30 = smov [#allocation5]   ;;  %s169_s3 = int_to_ptr.vmem [resolvable:$true] %s168_s3 }
  0x26   : > { %s566_s8 = scalar_lea.vmem %s169_s3, 128  ;;  %s571_s4 = sshll.u32 %s668_s30, 4  ;;  %s572_s4 = int_to_ptr.vmem [resolvable:$false] %s571_s4 }
  0x27   : > { %p567_p12 = scmp.ne.s32.totalorder %s169_s3, %s566_s8  ;;  %s573_s6 = scalar_lea.vmem %s572_s4, 256 }
  0x28   : > { %p574_p1 = scmp.lt.s32.totalorder %s169_s3, %s572_s4  ;;  %p575_p2 = scmp.lt.s32.totalorder %s573_s6, %s566_s8 }
  0x29   : > { %p569_p6 = pnand %p567_p12, %p527_p3 }
  0x2a   : > { %p576_p4 = por %p575_p2, %p574_p1 }
  0x2b   : > { %p570_p7 = pneg %p569_p6 }
  0x2d   : > { %p577_p10 = pnand %p576_p4, %p570_p7 }
  0x2f   : > { %580 = shalt.err (!%p577_p10)
}
  0x30   : > { %469 = dma.hbm_to_vmem [thread:$0]  (!%p760_p0), %s166_s28, 128, %s169_s3, %s155_s7  }
  0x31   : > { %177 = sbr.rel (%p778_p5) target bundleno = 284 (0x11c), region = 28  ;;  %s794_s25 = sand.u32 (!%p778_p5), 1, %s649_s10  }
  0x32   : > { %s448_s26 = sshll.u32 (!%p778_p5), %s794_s25, 3  ;;  %s180_s27 = scalar_lea.sflag (!%p778_p5), [#allocation3], %s794_s25 }
  0x33   : > { %s183_s15 = scalar_lea.vmem (!%p778_p5), [#allocation2], %s448_s26 }
  0x36   : > { %632 = dma.done.wait (%p733_p8), %s180_s27, 128  }
  0x37   : > { %634 = vsyncadd (%p733_p8), %s180_s27, 4294967168  ;;  %s189_s5 = scalar_lea.sflag [#allocation6], %s794_s25  ;;  %s192_s16 = scalar_lea.vmem [#allocation5], %s448_s26 }
  0x38   : > { %636 = dma.done.wait (%p733_p8), %s189_s5, 128  }
  0x39   : > { %638 = vsyncadd (%p733_p8), %s189_s5, 4294967168  ;;  %s450_s18 = sshll.u32 %s794_s25, 2  ;;  %vm224_vm0 = vcmask 27648   ;;  %v669_v0 = vmov 0.0   ;;  %v226_v1 = vld [vmem:[%s183_s15] sm:$0xff]  ;;  %v227_v2 = vld [vmem:[%s192_s16] sm:$0xff] }
  0x3a   : > { %s217_s19 = scalar_lea.vmem [#allocation7], %s450_s18  ;;  %v229_v3 = vsub.f32 %v226_v1, %v227_v2  ;;  %v228_v4 = vadd.f32 %v227_v2, %v226_v1  ;;  %s452_s21 = sshll.u32 %s657_s12, 6 }
  0x3b   : > { %225 = vst.msk [vmem:[%s217_s19] sm:$0xf] %vm224_vm0, %v669_v0  ;;  %s330_s20 = sshll.u32 %s217_s19, 4  ;;  %s328_s3 = scalar_lea.hbm %s853_s2, %s452_s21  ;;  %s331_s20 = int_to_ptr.vmem [resolvable:$true] %s330_s20 }
  0x3c   : > { %v235_v5 = vcombine.high %v229_v3, %v229_v3  ;;  %v232_v6 = vcombine.high %v228_v4, %v228_v4  ;;  %s317_s7 = scalar_lea.sflag [#allocation4], %s794_s25  ;;  %s581_s8 = scalar_lea.vmem %s331_s20, 64 }
  0x3d   : > { %p582_p8 = scmp.ne.s32.totalorder %s331_s20, %s581_s8  ;;  %s670_s30 = smov [#allocation7]  }
  0x3e   : > { %267 = vmatprep.subr.mxu0 %v235_v5  ;;  %301 = vmatprep.mubr.f32.mxu0 %v232_v6  ;;  %s585_s4 = sshll.u32 %s670_s30, 4  ;;  %s586_s4 = int_to_ptr.vmem [resolvable:$false] %s585_s4 }
  0x3f   : > { %268 = vmatpush1.xpose.msra.mxu0 %v229_v3  ;;  %p583_p0 = pnand %p582_p8, %p737_p9  ;;  %s587_s12 = scalar_lea.vmem %s586_s4, 128 }
  0x40   : > { %p588_p13 = scmp.lt.s32.totalorder %s331_s20, %s586_s4  ;;  %p589_p5 = scmp.lt.s32.totalorder %s587_s12, %s581_s8 }
  0x41   : > { %p584_p3 = pneg %p583_p0 }
  0x42   : > { %302 = vmatmul.mubr.f32.vlgmr.msra.gmra.mxu0 %v228_v4  ;;  %v230_v7 = vld [vmem:[%s217_s19] sm:$0xf]  ;;  %p590_p12 = por %p589_p5, %p588_p13 }
  0x44   : > { %p591_p6 = pnand %p590_p12, %p584_p3 }
 0x102   : > { %v303_v8 = vpop.f32.mrf.mxu0 }
 0x103   : > { %v307_v9 = vadd.f32 %v303_v8, %v230_v7 }
 0x104   : > { %v305_v10 = vpop.f32.mrf.mxu0 }
 0x105   : > { %309 = vst.msk [vmem:[%s217_s19] sm:$0xf] %vm224_vm0, %v307_v9 }
 0x10c   : > { %v313_v11 = vld [vmem:[%s217_s19] sm:$0xf] }
 0x10d   : > { %v314_v12 = vmul.f32 0.00390625, %v313_v11 }
 0x10f   : > { %315 = vst.msk [vmem:[%s217_s19] sm:$0xf] %vm224_vm0, %v314_v12 }
 0x110   : > { %594 = shalt.err (!%p591_p6)
}
 0x111   : > { %s595_s6 = scalar_lea.hbm %s328_s3, 64  ;;  %s599_s27 = scalar_lea.hbm %s853_s2, 128 }
 0x112   : > { %p596_p7 = scmp.ne.s32.totalorder %s328_s3, %s595_s6  ;;  %p600_p4 = scmp.lt.s32.totalorder %s328_s3, %s853_s2 }
 0x113   : > { %p601_p10 = scmp.lt.s32.totalorder %s599_s27, %s595_s6 }
 0x114   : > { %p597_p1 = pnand %p596_p7, %p737_p9 }
 0x115   : > { %p602_p8 = por %p601_p10, %p600_p4 }
 0x116   : > { %p598_p2 = pneg %p597_p1 }
 0x118   : > { %p603_p0 = pnand %p602_p8, %p598_p2 }
 0x11a   : > { %606 = shalt.err (!%p603_p0)
}
 0x11b   : > { %461 = dma.vmem_to_hbm [thread:$0]  (%p737_p9), %s331_s20, 64, %s328_s3, %s317_s7  }
 0x11c PF: > { %s342_s16 = sand.u32 1, %s645_s9   ;;  %p860_p3 = scmp.ge.s32.totalorder %s665_s14, 2 }
 0x11d   : > { %s343_s18 = scalar_lea.sflag [#allocation4], %s342_s16 }
 0x11e   : > { %p471_p13 = pnand %p860_p3, %p744_p11 }
 0x120   : > { %p472_p5 = pneg %p471_p13 }
 0x122   : > { %640 = dma.done.wait (%p472_p5), %s343_s18, 64  }
 0x123   : > { %642 = vsyncadd (%p472_p5), %s343_s18, 4294967232  ;;  %s21_s14 = sadd.s32 1, %s665_s14   ;;  %s861_s9 = smov %s649_s10 }
 0x124   : > { %p18_p12 = scmp.ge.s32.totalorder %s21_s14, 4   ;;  %s862_s10 = smov %s653_s11 }
 0x125   : > { %s863_s11 = smov %s742_s23  ;;  %s864_s12 = smov %s661_s13 }
 0x126   : > { %s865_s13 = smov %s867_s17  ;;  %20 = sbr.rel (!%p18_p12) target bundleno = 8 (0x8), region = 94 }
 0x12b   :  { %348 = vsyncpa [#allocation3], 1 }
 0x12c   :  { %350 = vsyncpa [#allocation3 + $0x1], 1 }
 0x12d   :  { %351 = vsyncpa [#allocation6], 1 }
 0x12e   :  { %353 = vsyncpa [#allocation6 + $0x1], 1 }
 0x12f   :  { %354 = vsyncpa [#allocation4], 1 }
 0x130   :  { %356 = vsyncpa [#allocation4 + $0x1], 1 }

</bundles_post_ra>
